<compile_context>
chip_gen: v7x
topology: tpu7x:2x2x1
jax: 0.10.0
libtpu: 0.0.40
codegen_flags: <defaults>
</compile_context>

<pallas_src>
import functools
import math

import jax
import jax.numpy as jnp
from jax import lax
from jax.experimental import pallas as pl
from jax.experimental.pallas import tpu as pltpu


def _contrastive_loss_kernel(x_row_ref, x_col_ref, x_pair_ref, loss_ref,
                             xrow_s, row_sum, *, tau, eps, normalize,
                             pos_in_denom):
    k = pl.program_id(1)
    nk = pl.num_programs(1)
    inv_tau = jnp.float32(1.0 / tau)
    # 1/max(norm, sqrt(eps)) == min(rsqrt(norm^2), 1/sqrt(eps)); keeps the
    # per-row normalization on the EUP (rsqrt) + a single VPU min/multiply.
    inv_sqrt_eps = jnp.float32(1.0 / math.sqrt(eps))
    # Self-similarity term exp(1/tau) the reference subtracts from the denom.
    self_term = jnp.float32(math.exp(1.0 / tau))

    def _normalized(x):
        # [R, F] -> row-normalized [R, F], clamped against zero-norm rows.
        ss = jnp.sum(x * x, axis=1, keepdims=True)
        inv_n = jnp.minimum(lax.rsqrt(ss), inv_sqrt_eps)
        return x * inv_n

    # --- init: normalize + tau-scale the row slab once per row block -------
    @pl.when(k == 0)
    def _init():
        xr = x_row_ref[...].astype(jnp.float32)                  # [TM, F]
        if normalize:
            xr = _normalized(xr)
        xrow_s[...] = xr * inv_tau                               # folds 1/tau
        row_sum[...] = jnp.zeros_like(row_sum)

    # --- streamed column slab: normalize, matmul (no transpose), exp, sum --
    xc = x_col_ref[...].astype(jnp.float32)                      # [TN, F]
    if normalize:
        xc = _normalized(xc)
    logits = lax.dot_general(                                    # [TM, TN]
        xrow_s[...], xc,
        dimension_numbers=(((1,), (1,)), ((), ())),
        preferred_element_type=jnp.float32)
    row_sum[...] += jnp.sum(jnp.exp(logits), axis=1, keepdims=True)

    # --- finalize: positive pair, denominator, per-row loss -----------------
    @pl.when(k == nk - 1)
    def _finalize():
        xp = x_pair_ref[...].astype(jnp.float32)                 # [TM, F]
        if normalize:
            xp = _normalized(xp)
        # xrow_s already carries the 1/tau factor -> pos_logit = sim/tau.
        pos_logit = jnp.sum(xrow_s[...] * xp, axis=1, keepdims=True)  # [TM, 1]
        denom = row_sum[...] - self_term
        if not pos_in_denom:
            denom = denom - jnp.exp(pos_logit)
        loss_ref[...] = (jnp.log(jnp.maximum(denom, jnp.float32(eps)))
                         - pos_logit)


def _pick_tile(n, target):
    """Largest divisor of n that is a multiple of 8 and <= target."""
    t = min(target, n)
    while t >= 8:
        if n % t == 0 and t % 8 == 0:
            return t
        t -= 1
    raise ValueError(f"no multiple-of-8 tile divides {n}")


def contrastive_loss(x_i, x_j, *, normalize=True, tau=0.5, eps=1e-8,
                     pos_in_denom=False, tile_rows=256, tile_cols=256):
    """Pallas TPU implementation of ContrastiveLoss.forward(x_i, x_j)."""
    assert x_i.shape == x_j.shape and x_i.ndim == 2
    batch, feat = x_i.shape
    assert batch % 8 == 0, "batch must be a multiple of 8 for the tiled kernel"
    rows = 2 * batch
    x = jnp.concatenate([x_i, x_j], axis=0)                      # [2B, F]

    tm = _pick_tile(batch, tile_rows)   # divides B  -> pair block is a whole block
    tn = _pick_tile(rows, tile_cols)    # divides 2B
    nbi = rows // tm
    nbk = rows // tn

    kernel = functools.partial(
        _contrastive_loss_kernel,
        tau=float(tau), eps=float(eps),
        normalize=bool(normalize), pos_in_denom=bool(pos_in_denom))

    itemsize = jnp.dtype(x.dtype).itemsize
    cost = pl.CostEstimate(
        flops=2 * rows * rows * feat,
        transcendentals=rows * rows + 4 * rows,
        bytes_accessed=(nbi * rows + 2 * rows) * feat * itemsize + rows * 4)

    per_row_loss = pl.pallas_call(
        kernel,
        out_shape=jax.ShapeDtypeStruct((rows, 1), jnp.float32),
        grid_spec=pltpu.PrefetchScalarGridSpec(
            num_scalar_prefetch=0,
            grid=(nbi, nbk),
            in_specs=[
                # row slab: resident across the whole k loop
                pl.BlockSpec((tm, feat), lambda i, k: (i, 0)),
                # column slab: streamed along k (double-buffered by Pallas)
                pl.BlockSpec((tn, feat), lambda i, k: (k, 0)),
                # positive-pair slab: the "other view" rows for this row block
                pl.BlockSpec((tm, feat), lambda i, k: ((i + nbi // 2) % nbi, 0)),
            ],
            out_specs=pl.BlockSpec((tm, 1), lambda i, k: (i, 0)),
            scratch_shapes=[
                pltpu.VMEM((tm, feat), jnp.float32),   # normalized/scaled rows
                pltpu.VMEM((tm, 1), jnp.float32),      # running row sums
            ]),
        compiler_params=pltpu.CompilerParams(
            dimension_semantics=("parallel", "arbitrary"),
            vmem_limit_bytes=64 * 1024 * 1024),
        cost_estimate=cost,
    )(x, x, x)

    # Final O(2B) mean kept as plain-JAX glue so the row-block grid axis can
    # stay "parallel" (megacore) instead of serializing on a scalar output.
    return jnp.mean(per_row_loss)
    # TODO(synk): the reference clamps the *product* of norms at eps; we clamp
    # each norm at sqrt(eps) (identical unless a row norm is below sqrt(eps)).


def contrastive_loss_ref(x_i, x_j, *, normalize=True, tau=0.5, eps=1e-8,
                         pos_in_denom=False):
    """Pure-JAX reference mirroring the PyTorch forward, for verification."""
    x = jnp.concatenate([x_i, x_j], axis=0).astype(jnp.float32)
    sim_mat = x @ x.T
    if normalize:
        n = jnp.linalg.norm(x, axis=1, keepdims=True)
        sim_mat = sim_mat / jnp.maximum(n @ n.T, eps)
    sim_mat = jnp.exp(sim_mat / tau)
    if normalize:
        d = jnp.linalg.norm(x_i, axis=1) * jnp.linalg.norm(x_j, axis=1)
        sim_match = jnp.exp(jnp.sum(x_i * x_j, axis=-1) / jnp.maximum(d, eps) / tau)
    else:
        sim_match = jnp.exp(jnp.sum(x_i * x_j, axis=-1) / tau)
    sim_match = jnp.concatenate([sim_match, sim_match], axis=0)
    norm_sum = jnp.exp(jnp.ones(x.shape[0]) / tau)
    if pos_in_denom:
        loss_denom = jnp.sum(sim_mat, axis=-1) - norm_sum
    else:
        loss_denom = jnp.sum(sim_mat, axis=-1) - sim_match - norm_sum
    return jnp.mean(-jnp.log(sim_match / jnp.maximum(loss_denom, eps)))


if __name__ == "__main__":
    key = jax.random.PRNGKey(0)
    k_i, k_j = jax.random.split(key)

    # Small deterministic example: batch=8, feature=128 (single k block).
    B, F = 8, 128
    x_i = jax.random.normal(k_i, (B, F), dtype=jnp.float32)
    x_j = jax.random.normal(k_j, (B, F), dtype=jnp.float32)

    loss = contrastive_loss(x_i, x_j)
    jax.block_until_ready(loss)
    ref = contrastive_loss_ref(x_i, x_j)
    assert jnp.allclose(loss, ref, rtol=1e-4, atol=1e-4), (loss, ref)

    # Option variants.
    loss_p = contrastive_loss(x_i, x_j, pos_in_denom=True)
    ref_p = contrastive_loss_ref(x_i, x_j, pos_in_denom=True)
    assert jnp.allclose(loss_p, ref_p, rtol=1e-4, atol=1e-4), (loss_p, ref_p)

    x_i_s, x_j_s = 0.05 * x_i, 0.05 * x_j   # keep exp() finite w/o normalize
    loss_n = contrastive_loss(x_i_s, x_j_s, normalize=False)
    ref_n = contrastive_loss_ref(x_i_s, x_j_s, normalize=False)
    assert jnp.allclose(loss_n, ref_n, rtol=1e-4, atol=1e-4), (loss_n, ref_n)

    # Larger case exercising a multi-block grid (2 row blocks x 2 col blocks).
    B2, F2 = 256, 128
    kk = jax.random.split(jax.random.PRNGKey(0), 2)
    y_i = jax.random.normal(kk[0], (B2, F2), dtype=jnp.float32)
    y_j = jax.random.normal(kk[1], (B2, F2), dtype=jnp.float32)
    loss2 = contrastive_loss(y_i, y_j)
    jax.block_until_ready(loss2)
    ref2 = contrastive_loss_ref(y_i, y_j)
    assert jnp.allclose(loss2, ref2, rtol=1e-4, atol=1e-4), (loss2, ref2)

    print("KERNEL_OK")
</pallas_src>

<mosaic_0001>
module attributes {stable_mosaic.version = 11 : i64} {
  func.func @_contrastive_loss_kernel(%arg0: i32, %arg1: i32, %arg2: memref<8x128xf32, #tpu.memory_space<vmem>>, %arg3: memref<16x128xf32, #tpu.memory_space<vmem>>, %arg4: memref<8x128xf32, #tpu.memory_space<vmem>>, %arg5: memref<8x1xf32, #tpu.memory_space<vmem>>, %arg6: memref<8x128xf32, #tpu.memory_space<vmem>>, %arg7: memref<8x1xf32, #tpu.memory_space<vmem>>) attributes {dimension_semantics = [#tpu.dimension_semantics<parallel>, #tpu.dimension_semantics<arbitrary>], iteration_bounds = array<i64: 2, 1>, scalar_prefetch = 0 : i64, scratch_operands = 2 : i64, tpu.core_type = #tpu.core_type<tc>, window_params = [{transform_indices = @transform_0, window_bounds = array<i64: 8, 128>}, {transform_indices = @transform_1, window_bounds = array<i64: 16, 128>}, {transform_indices = @transform_2, window_bounds = array<i64: 8, 128>}, {transform_indices = @transform_3, window_bounds = array<i64: 8, 1>}]} {
    %c0_i32 = arith.constant 0 : i32
    %0 = arith.cmpi eq, %arg1, %c0_i32 : i32
    %1 = arith.extui %0 : i1 to i32
    %cst = arith.constant 1.000000e+04 : f32
    %cst_0 = arith.constant 2.000000e+00 : f32
    %c0_i32_1 = arith.constant 0 : i32
    %2 = arith.cmpi ne, %1, %c0_i32_1 : i32
    scf.if %2 {
      %c0_17 = arith.constant 0 : index
      %c0_18 = arith.constant 0 : index
      %23 = vector.load %arg2[%c0_17, %c0_18] : memref<8x128xf32, #tpu.memory_space<vmem>>, vector<8x128xf32>
      %24 = arith.mulf %23, %23 : vector<8x128xf32>
      %cst_19 = arith.constant dense<0.000000e+00> : vector<8xf32>
      %25 = vector.multi_reduction <add>, %24, %cst_19 [1] : vector<8x128xf32> to vector<8xf32>
      %26 = vector.shape_cast %25 : vector<8xf32> to vector<8x1xf32>
      %27 = math.rsqrt %26 : vector<8x1xf32>
      %28 = vector.broadcast %cst : f32 to vector<8x1xf32>
      %29 = arith.minimumf %27, %28 : vector<8x1xf32>
      %30 = vector.broadcast %29 : vector<8x1xf32> to vector<8x128xf32>
      %31 = arith.mulf %23, %30 : vector<8x128xf32>
      %32 = vector.broadcast %cst_0 : f32 to vector<8x128xf32>
      %33 = arith.mulf %31, %32 : vector<8x128xf32>
      %c0_20 = arith.constant 0 : index
      %c0_21 = arith.constant 0 : index
      %34 = vector.load %arg6[%c0_20, %c0_21] : memref<8x128xf32, #tpu.memory_space<vmem>>, vector<8x128xf32>
      tpu.vector_store %arg6[%c0_20, %c0_21], %33 {strides = array<i32>} : memref<8x128xf32, #tpu.memory_space<vmem>>, vector<8x128xf32>,
      %cst_22 = arith.constant 0.000000e+00 : f32
      %35 = vector.broadcast %cst_22 : f32 to vector<8x1xf32>
      %c0_23 = arith.constant 0 : index
      %c0_24 = arith.constant 0 : index
      %36 = vector.load %arg7[%c0_23, %c0_24] : memref<8x1xf32, #tpu.memory_space<vmem>>, vector<8x1xf32>
      tpu.vector_store %arg7[%c0_23, %c0_24], %35 {strides = array<i32>} : memref<8x1xf32, #tpu.memory_space<vmem>>, vector<8x1xf32>,
    } else {
    }
    %c0 = arith.constant 0 : index
    %c0_2 = arith.constant 0 : index
    %3 = vector.load %arg3[%c0, %c0_2] : memref<16x128xf32, #tpu.memory_space<vmem>>, vector<16x128xf32>
    %4 = arith.mulf %3, %3 : vector<16x128xf32>
    %cst_3 = arith.constant dense<0.000000e+00> : vector<16xf32>
    %5 = vector.multi_reduction <add>, %4, %cst_3 [1] : vector<16x128xf32> to vector<16xf32>
    %6 = vector.shape_cast %5 : vector<16xf32> to vector<16x1xf32>
    %7 = math.rsqrt %6 : vector<16x1xf32>
    %cst_4 = arith.constant 1.000000e+04 : f32
    %8 = vector.broadcast %cst_4 : f32 to vector<16x1xf32>
    %9 = arith.minimumf %7, %8 : vector<16x1xf32>
    %10 = vector.broadcast %9 : vector<16x1xf32> to vector<16x128xf32>
    %11 = arith.mulf %3, %10 : vector<16x128xf32>
    %c0_5 = arith.constant 0 : index
    %c0_6 = arith.constant 0 : index
    %12 = vector.load %arg6[%c0_5, %c0_6] : memref<8x128xf32, #tpu.memory_space<vmem>>, vector<8x128xf32>
    %cst_7 = arith.constant dense<0.000000e+00> : vector<8x16xf32>
    %13 = tpu.matmul %12, %11, %cst_7 {dimension_numbers = #tpu.dot_dimension_numbers<[1], [1], [0], [0], [0, 0, 1, 0], [], []>} : vector<8x128xf32>, vector<16x128xf32>, vector<8x16xf32> -> vector<8x16xf32>
    %c0_8 = arith.constant 0 : index
    %c0_9 = arith.constant 0 : index
    %14 = vector.load %arg7[%c0_8, %c0_9] : memref<8x1xf32, #tpu.memory_space<vmem>>, vector<8x1xf32>
    %15 = math.exp %13 : vector<8x16xf32>
    %cst_10 = arith.constant dense<0.000000e+00> : vector<8xf32>
    %16 = vector.multi_reduction <add>, %15, %cst_10 [1] : vector<8x16xf32> to vector<8xf32>
    %17 = vector.shape_cast %16 : vector<8xf32> to vector<8x1xf32>
    %18 = arith.addf %14, %17 : vector<8x1xf32>
    %c0_11 = arith.constant 0 : index
    %c0_12 = arith.constant 0 : index
    %19 = vector.load %arg7[%c0_11, %c0_12] : memref<8x1xf32, #tpu.memory_space<vmem>>, vector<8x1xf32>
    tpu.vector_store %arg7[%c0_11, %c0_12], %18 {strides = array<i32>} : memref<8x1xf32, #tpu.memory_space<vmem>>, vector<8x1xf32>,
    %c0_i32_13 = arith.constant 0 : i32
    %20 = arith.cmpi eq, %arg1, %c0_i32_13 : i32
    %21 = arith.extui %20 : i1 to i32
    %cst_14 = arith.constant 1.000000e+04 : f32
    %cst_15 = arith.constant 7.3890562 : f32
    %c0_i32_16 = arith.constant 0 : i32
    %22 = arith.cmpi ne, %21, %c0_i32_16 : i32
    scf.if %22 {
      %c0_17 = arith.constant 0 : index
      %c0_18 = arith.constant 0 : index
      %23 = vector.load %arg4[%c0_17, %c0_18] : memref<8x128xf32, #tpu.memory_space<vmem>>, vector<8x128xf32>
      %24 = arith.mulf %23, %23 : vector<8x128xf32>
      %cst_19 = arith.constant dense<0.000000e+00> : vector<8xf32>
      %25 = vector.multi_reduction <add>, %24, %cst_19 [1] : vector<8x128xf32> to vector<8xf32>
      %26 = vector.shape_cast %25 : vector<8xf32> to vector<8x1xf32>
      %27 = math.rsqrt %26 : vector<8x1xf32>
      %28 = vector.broadcast %cst_14 : f32 to vector<8x1xf32>
      %29 = arith.minimumf %27, %28 : vector<8x1xf32>
      %30 = vector.broadcast %29 : vector<8x1xf32> to vector<8x128xf32>
      %31 = arith.mulf %23, %30 : vector<8x128xf32>
      %c0_20 = arith.constant 0 : index
      %c0_21 = arith.constant 0 : index
      %32 = vector.load %arg6[%c0_20, %c0_21] : memref<8x128xf32, #tpu.memory_space<vmem>>, vector<8x128xf32>
      %33 = arith.mulf %32, %31 : vector<8x128xf32>
      %cst_22 = arith.constant dense<0.000000e+00> : vector<8xf32>
      %34 = vector.multi_reduction <add>, %33, %cst_22 [1] : vector<8x128xf32> to vector<8xf32>
      %35 = vector.shape_cast %34 : vector<8xf32> to vector<8x1xf32>
      %c0_23 = arith.constant 0 : index
      %c0_24 = arith.constant 0 : index
      %36 = vector.load %arg7[%c0_23, %c0_24] : memref<8x1xf32, #tpu.memory_space<vmem>>, vector<8x1xf32>
      %37 = vector.broadcast %cst_15 : f32 to vector<8x1xf32>
      %38 = arith.subf %36, %37 : vector<8x1xf32>
      %39 = math.exp %35 : vector<8x1xf32>
      %40 = arith.subf %38, %39 : vector<8x1xf32>
      %cst_25 = arith.constant 9.99999993E-9 : f32
      %41 = vector.broadcast %cst_25 : f32 to vector<8x1xf32>
      %42 = arith.maximumf %40, %41 : vector<8x1xf32>
      %43 = math.log %42 : vector<8x1xf32>
      %44 = arith.subf %43, %35 : vector<8x1xf32>
      %c0_26 = arith.constant 0 : index
      %c0_27 = arith.constant 0 : index
      %45 = vector.load %arg5[%c0_26, %c0_27] : memref<8x1xf32, #tpu.memory_space<vmem>>, vector<8x1xf32>
      tpu.vector_store %arg5[%c0_26, %c0_27], %44 {strides = array<i32>} : memref<8x1xf32, #tpu.memory_space<vmem>>, vector<8x1xf32>,
    } else {
    }
    return
  }
  func.func @transform_0(%arg0: i32, %arg1: i32) -> (i32, i32) {
    %c0_i32 = arith.constant 0 : i32
    %c0_i32_0 = arith.constant 0 : i32
    return %arg0, %c0_i32 : i32, i32
  }
  func.func @transform_1(%arg0: i32, %arg1: i32) -> (i32, i32) {
    %c0_i32 = arith.constant 0 : i32
    %c0_i32_0 = arith.constant 0 : i32
    return %arg1, %c0_i32 : i32, i32
  }
  func.func @transform_2(%arg0: i32, %arg1: i32) -> (i32, i32) {
    %c1_i32 = arith.constant 1 : i32
    %0 = arith.addi %arg0, %c1_i32 : i32
    %c2_i32 = arith.constant 2 : i32
    %c0_i32 = arith.constant 0 : i32
    %1 = arith.cmpi eq, %c2_i32, %c0_i32 : i32
    %c1_i32_0 = arith.constant 1 : i32
    %2 = arith.select %1, %c1_i32_0, %c2_i32 : i32
    %3 = arith.remsi %0, %2 : i32
    %c0_i32_1 = arith.constant 0 : i32
    %4 = arith.cmpi ne, %3, %c0_i32_1 : i32
    %c0_i32_2 = arith.constant 0 : i32
    %5 = arith.cmpi slt, %3, %c0_i32_2 : i32
    %c0_i32_3 = arith.constant 0 : i32
    %6 = arith.cmpi slt, %2, %c0_i32_3 : i32
    %7 = arith.xori %5, %6 : i1
    %8 = arith.andi %7, %4 : i1
    %9 = arith.addi %3, %2 : i32
    %10 = arith.select %8, %9, %3 : i32
    %c0_i32_4 = arith.constant 0 : i32
    %c0_i32_5 = arith.constant 0 : i32
    return %10, %c0_i32_4 : i32, i32
  }
  func.func @transform_3(%arg0: i32, %arg1: i32) -> (i32, i32) {
    %c0_i32 = arith.constant 0 : i32
    %c0_i32_0 = arith.constant 0 : i32
    return %arg0, %c0_i32 : i32, i32
  }
}

</mosaic_0001>

<bundles_post_ra>
// kernel: tpu_custom_call.1
= control target key start
LH: loop header
LB: loop body
LE: loop exit
PB: predicated region body
PF: predicated region fallthrough
CT: control target
= control target key end

     0   :  { %s1290_s0 = inlined_call_operand.hbm [shape: f32[16,128], index: 0, kind: input, shape index: {}]   ;;  %s1291_s1 = inlined_call_operand.hbm [shape: f32[16,128], index: 1, kind: input, shape index: {}]   ;;  %s1292_s2 = inlined_call_operand.hbm [shape: f32[16,128], index: 2, kind: input, shape index: {}]   ;;  %s1293_s3 = inlined_call_operand.hbm [shape: f32[16,1], index: 3, kind: output, shape index: {}]  }
   0x1   :  { %1303 = sst [smem:[#allocation17_spill]] %s1290_s0 }
   0x2   :  { %8 = vsyncpa [#allocation5], 0 }
   0x3   :  { %10 = vsyncpa [#allocation5 + $0x1], 0 }
   0x4   :  { %11 = vsyncpa [#allocation8], 0 }
   0x5   :  { %12 = vsyncpa [#allocation6], 0 }
   0x6   :  { %14 = vsyncpa [#allocation6 + $0x1], 0  ;;  %s961_s12 = smov 0   ;;  %s963_s13 = smov 0  }
   0x7   :  { %s965_s14 = smov 0   ;;  %s967_s15 = smov 0  }
   0x8   :  { %s969_s16 = smov 0   ;;  %s971_s17 = smov 0  }
   0x9   :  { %s973_s18 = smov 0   ;;  %s975_s19 = smov 0  }
   0xa   :  { %s977_s20 = smov 0  }
   0xb LB: > { %1304 = sst [smem:[#allocation15_spill]] %s926_s19  ;;  %s1007_s21 = sadd.s32 4294967295, %s930_s20   ;;  %s930_s20 = sphi %s977_s20, %s20_s20   ;;  %s926_s19 = sphi %s975_s19, %s1328_s19   ;;  %s922_s18 = sphi %s973_s18, %s1327_s18   ;;  %s918_s17 = sphi %s971_s17, %s1334_s17   ;;  %s914_s16 = sphi %s969_s16, %s1333_s16   ;;  %s910_s15 = sphi %s967_s15, %s1332_s15   ;;  %s906_s14 = sphi %s965_s14, %s1331_s14   ;;  %s902_s13 = sphi %s963_s13, %s1330_s13   ;;  %s898_s12 = sphi %s961_s12, %s1329_s12  }
   0xc   : > { %s567_s22 = sadd.s32 4294967294, %s930_s20   ;;  %s32_s23 = sadd.s32 1, %s926_s19 }
   0xd   : > { %s39_s24 = sadd.s32 1, %s918_s17  ;;  %p34_p0 = scmp.ge.s32.totalorder %s32_s23, 2 }
   0xe   : > { %p46_p1 = scmp.ne.s32.totalorder %s918_s17, %s914_s16  ;;  %p1295_p2 = scmp.eq.s32.totalorder %s930_s20, 0 }
   0xf   : > { %p1296_p3 = scmp.ne.s32.totalorder %s914_s16, %s910_s15  ;;  %s90_s28 = ssub.s32 0, %s32_s23 }
  0x10   : > { %s1017_s25 = scalar_select %p34_p0, 0, %s32_s23  }
  0x11   : > { %p1024_p4 = por %p1295_p2, %p46_p1  ;;  %s1030_s29 = smin.u32 %s90_s28, %s32_s23 }
  0x12   : > { %1305 = sst [smem:[#allocation16_spill]] %s1017_s25  ;;  %s36_s27 = ssub.s32 %s926_s19, %s1017_s25 }
  0x13   : > { %p37_p5 = scmp.eq.s32.totalorder %s36_s27, 0  ;;  %s101_s30 = sadd.s32 1, %s1017_s25 }
  0x14   : > { %p154_p6 = scmp.eq.s32.totalorder %s1007_s21, 1  ;;  %s103_s5 = ssub.s32 0, %s101_s30 }
  0x15   : > { %s1035_s4 = scalar_select %p37_p5, %s918_s17, %s39_s24  }
  0x16   : > { %s571_s6 = smin.u32 %s103_s5, %s101_s30  ;;  %p1040_p7 = por %p154_p6, %p46_p1 }
  0x17   : > { %s1044_s8 = sand.u32 1, %s571_s6   ;;  %p160_p8 = scmp.eq.s32.totalorder %s567_s22, 1 }
  0x18   : > { %s1307_s7 = scalar_select %p1040_p7, 1, 0 }
  0x19   : > { %p1049_p9 = por %p160_p8, %p1296_p3  ;;  %p1294_p11 = scmp.lt.s32.totalorder %s930_s20, 2 }
  0x1a   : > { %s196_s10 = sand.u32 1, %s930_s20   ;;  %s198_s11 = sand.u32 1, %s918_s17  }
  0x1b   : > { %s1308_s9 = scalar_select %p1049_p9, 1, 0 }
  0x1c   : > { %s577_s23 = sshll.u32 %s198_s11, 3  ;;  %s578_s24 = sshll.u32 %s926_s19, 7 }
  0x1d   : > { %s1309_s0 = sld [smem:[#allocation17_spill]]  ;;  %s200_s22 = scalar_lea.vmem [#allocation4], %s577_s23 }
  0x1e   : > { %s207_s5 = sshll.u32 %s200_s22, 4  ;;  %p1067_p12 = pnand %p1294_p11, %p1024_p4  ;;  %s1071_s5 = int_to_ptr.vmem [resolvable:$true] %s207_s5 }
  0x1f   : > { %s1073_s11 = scalar_lea.sflag [#allocation5], %s196_s10 }
  0x20   : > { %p730_p0 = pneg %p1067_p12 }
  0x23   : > { %s1061_s30 = scalar_lea.hbm %s1309_s0, %s578_s24  ;;  %s733_s27 = scalar_lea.hbm %s1309_s0, 256 }
  0x24   : > { %s728_s24 = scalar_lea.hbm %s1061_s30, 128  ;;  %p734_p4 = scmp.lt.u32.totalorder %s1061_s30, %s1309_s0 }
  0x25   : > { %p729_p13 = scmp.ne.s32.totalorder %s1061_s30, %s728_s24  ;;  %p735_p6 = scmp.lt.u32.totalorder %s733_s27, %s728_s24 }
  0x26   : > { %p737_p10 = scmp.lt.u32.totalorder %s728_s24, %s1061_s30 }
  0x27   : > { %p731_p1 = pnand %p730_p0, %p729_p13  ;;  %p736_p8 = por %p735_p6, %p734_p4 }
  0x29   : > { %p732_p5 = pneg %p731_p1  ;;  %p738_p11 = por %p737_p10, %p736_p8 }
  0x2b   : > { %p739_p2 = pnand %p738_p11, %p732_p5 }
  0x2d   : > { %742 = shalt.err (!%p739_p2)
}
  0x2e   : > { %s743_s10 = scalar_lea.vmem %s1071_s5, 128  ;;  %s932_s26 = smov [#allocation4]  }
  0x2f   : > { %p744_p13 = scmp.ne.s32.totalorder %s1071_s5, %s743_s10  ;;  %s748_s23 = sshll.u32 %s932_s26, 4  ;;  %s749_s23 = int_to_ptr.vmem [resolvable:$false] %s748_s23 }
  0x30   : > { %s750_s28 = scalar_lea.vmem %s749_s23, 256  ;;  %p751_p9 = scmp.lt.s32.totalorder %s1071_s5, %s749_s23 }
  0x31   : > { %p746_p1 = pnand %p744_p13, %p730_p0  ;;  %p752_p4 = scmp.lt.s32.totalorder %s750_s28, %s743_s10 }
  0x33   : > { %p747_p3 = pneg %p746_p1  ;;  %p753_p6 = por %p752_p4, %p751_p9 }
  0x35   : > { %p754_p10 = pnand %p753_p6, %p747_p3 }
  0x37   : > { %757 = shalt.err (!%p754_p10)
}
  0x38   : > { %624 = dma.hbm_to_vmem [thread:$0]  (!%p1067_p12), %s1061_s30, 128, %s1071_s5, %s1073_s11  }
  0x39   : > { %p1299_p2 = scmp.eq.s32.totalorder %s1007_s21, 0  ;;  %p574_p11 = scmp.ge.s32.totalorder %s930_s20, 1 }
  0x3a   : > { %p167_p0 = scmp.lt.s32.totalorder %s930_s20, 3  ;;  %p1311_p9 = scmp.ne.s32.totalorder %s914_s16, %s910_s15 }
  0x3b   : > { %s933_s6 = smov [#allocation7]   ;;  %s92_s5 = sand.u32 1, %s1030_s29  }
  0x3c   : > { %p1109_p3 = por %p1299_p2, %p1311_p9  ;;  %s182_s27 = sshll.u32 %s933_s6, 4  ;;  %s183_s27 = int_to_ptr.vmem [resolvable:$true] %s182_s27 }
  0x3d   : > { %p1113_p5 = pnand %p574_p11, %p167_p0  ;;  %s758_s23 = scalar_lea.hbm %s1291_s1, 256 }
  0x3e   : > { %s1312_s24 = scalar_select %p1109_p3, 1, 0 }
  0x3f   : > { %s1313_s22 = scalar_select %p1113_p5, 1, 0 }
  0x40   : > { %p617_p8 = pneg %p1113_p5  ;;  %p759_p13 = scmp.ne.s32.totalorder %s1291_s1, %s758_s23 }
  0x41   : > { %p765_p10 = scmp.lt.u32.totalorder %s758_s23, %s1291_s1 }
  0x42   : > { %p1121_p12 = pnand %p617_p8, %p1299_p2 }
  0x44   : > { %p760_p1 = pneg %p1121_p12 }
  0x46   : > { %p761_p4 = pnand %p760_p1, %p759_p13 }
  0x48   : > { %p762_p6 = pneg %p761_p4 }
  0x4a   : > { %p767_p11 = pnand %p765_p10, %p762_p6 }
  0x4c   : > { %770 = shalt.err (!%p767_p11)
}
  0x4d   : > { %s771_s19 = scalar_lea.vmem %s183_s27, 256  ;;  %p779_p2 = scmp.lt.s32.totalorder %s183_s27, %s183_s27 }
  0x4e   : > { %p772_p0 = scmp.ne.s32.totalorder %s183_s27, %s771_s19  ;;  %p780_p7 = scmp.lt.s32.totalorder %s771_s19, %s771_s19 }
  0x50   : > { %p774_p9 = pnand %p772_p0, %p760_p1  ;;  %p781_p3 = por %p780_p7, %p779_p2 }
  0x52   : > { %p775_p8 = pneg %p774_p9 }
  0x54   : > { %p782_p5 = pnand %p781_p3, %p775_p8 }
  0x56   : > { %785 = shalt.err (!%p782_p5)
}
  0x57   : > { %s934_s29 = smov 128   ;;  %s935_s0 = smov 8  }
  0x58   : > { %620 = dma.hbm_to_vmem [thread:$0]  (!%p1121_p12), %s1291_s1, 256, %s183_s27, [#allocation8], %s934_s29, %s934_s29, %s935_s0  }
  0x59   : > { %s117_s10 = sadd.s32 1, %s906_s14  ;;  %p570_p7 = scmp.lt.s32.totalorder %s92_s5, 0 }
  0x5a   : > { %s99_s26 = sadd.s32 2, %s92_s5  ;;  %p573_p2 = scmp.lt.s32.totalorder %s1044_s8, 0 }
  0x5b   : > { %s112_s23 = sadd.s32 2, %s1044_s8  ;;  %s1336_s26 = smov (!%p570_p7, %s99_s26), %s92_s5 }
  0x5c   : > { %s1338_s23 = smov (!%p573_p2, %s112_s23), %s1044_s8  ;;  %p124_p3 = scmp.ne.s32.totalorder %s906_s14, %s902_s13 }
  0x5d   : > { %p130_p5 = scmp.ne.s32.totalorder %s902_s13, %s898_s12  ;;  %s114_s28 = ssub.s32 %s1336_s26, %s1338_s23 }
  0x5e   : > { %s216_s6 = sand.u32 1, %s906_s14   ;;  %p115_p13 = scmp.eq.s32.totalorder %s114_s28, 0 }
  0x5f   : > { %p1315_p1 = scmp.eq.s32.totalorder %s930_s20, 0  ;;  %p1316_p6 = scmp.eq.s32.totalorder %s1007_s21, 0 }
  0x60   : > { %s579_s27 = sshll.u32 %s216_s6, 3  ;;  %s583_s0 = sshll.u32 %s1336_s26, 7 }
  0x61   : > { %p126_p4 = por %p124_p3, %p1315_p1  ;;  %p1155_p10 = por %p130_p5, %p1316_p6 }
  0x62   : > { %s1160_s29 = scalar_select %p115_p13, %s906_s14, %s117_s10  }
  0x63   : > { %s1165_s8 = scalar_lea.hbm %s1292_s2, %s583_s0  ;;  %s218_s12 = scalar_lea.vmem [#allocation9], %s579_s27 }
  0x64   : > { %s238_s19 = sshll.u32 %s218_s12, 4  ;;  %p1318_p12 = scmp.lt.s32.totalorder %s930_s20, 2  ;;  %s1167_s19 = int_to_ptr.vmem [resolvable:$true] %s238_s19 }
  0x65   : > { %s786_s10 = scalar_lea.hbm %s1165_s8, 128  ;;  %s791_s6 = scalar_lea.hbm %s1292_s2, 256 }
  0x66   : > { %p1171_p11 = pnand %p1318_p12, %p126_p4  ;;  %p787_p0 = scmp.ne.s32.totalorder %s1165_s8, %s786_s10 }
  0x67   : > { %p792_p2 = scmp.lt.u32.totalorder %s1165_s8, %s1292_s2  ;;  %p793_p3 = scmp.lt.u32.totalorder %s791_s6, %s786_s10 }
  0x68   : > { %p788_p9 = pneg %p1171_p11  ;;  %p795_p13 = scmp.lt.u32.totalorder %s786_s10, %s1165_s8 }
  0x69   : > { %p794_p5 = por %p793_p3, %p792_p2 }
  0x6a   : > { %p789_p8 = pnand %p788_p9, %p787_p0 }
  0x6b   : > { %p796_p1 = por %p795_p13, %p794_p5 }
  0x6c   : > { %p790_p7 = pneg %p789_p8 }
  0x6e   : > { %p797_p4 = pnand %p796_p1, %p790_p7 }
  0x70   : > { %800 = shalt.err (!%p797_p4)
}
  0x71   : > { %s801_s25 = scalar_lea.vmem %s1167_s19, 128  ;;  %s936_s5 = smov [#allocation9]  }
  0x72   : > { %p802_p6 = scmp.ne.s32.totalorder %s1167_s19, %s801_s25  ;;  %s806_s12 = sshll.u32 %s936_s5, 4  ;;  %s807_s12 = int_to_ptr.vmem [resolvable:$false] %s806_s12 }
  0x73   : > { %s808_s26 = scalar_lea.vmem %s807_s12, 256  ;;  %p809_p8 = scmp.lt.s32.totalorder %s1167_s19, %s807_s12 }
  0x74   : > { %p804_p12 = pnand %p802_p6, %p788_p9  ;;  %p810_p2 = scmp.lt.s32.totalorder %s808_s26, %s801_s25 }
  0x76   : > { %p805_p0 = pneg %p804_p12  ;;  %p811_p3 = por %p810_p2, %p809_p8 }
  0x78   : > { %p812_p5 = pnand %p811_p3, %p805_p0 }
  0x7a   : > { %815 = shalt.err (!%p812_p5)
}
  0x7b   : > { %627 = dma.hbm_to_vmem [thread:$0]  (!%p1171_p11), %s1165_s8, 128, %s1167_s19, %s1073_s11  }
  0x7c   : > { %p1320_p7 = scmp.ne.s32.totalorder %s1313_s22, 0 }
  0x7d   : > { %s249_s10 = sand.u32 (!%p1320_p7), 1, %s1007_s21   ;;  %s251_s28 = sand.u32 (!%p1320_p7), 1, %s914_s16  }
  0x7e   : > { %247 = sbr.rel (%p1320_p7) target bundleno = 727 (0x2d7), region = 32  ;;  %s1207_s6 = sshll.u32 (!%p1320_p7), %s251_s28, 3 }
  0x7f   : > { %s250_s27 = scalar_lea.sflag (!%p1320_p7), [#allocation5], %s249_s10  ;;  %s253_s0 = scalar_lea.vmem (!%p1320_p7), [#allocation4], %s1207_s6 }
  0x80   : > { %p1321_p9 = scmp.ne.s32.totalorder (!%p1320_p7), %s1312_s24, 0 }
  0x85   : > { %881 = dma.done.wait (%p1321_p9), %s250_s27, 128  }
  0x86   : > { %883 = vsyncadd (%p1321_p9), %s250_s27, 4294967168  ;;  %p1322_p11 = scmp.eq.s32.totalorder %s1007_s21, 0 }
  0x88   : > { %885 = dma.done.wait (%p1322_p11), [#allocation8], 256   ;;  %p1323_p13 = pmov %p1322_p11 }
  0x89   : > { %s264_s11 = sand.u32 1, %s902_s13  }
  0x8a   : > { %887 = vsyncadd (%p1323_p13), [#allocation8], 4294967040  ;;  %s587_s22 = sshll.u32 %s264_s11, 3 }
  0x8b   : > { %s266_s8 = scalar_lea.vmem [#allocation9], %s587_s22 }
  0x8c   : > { %889 = dma.done.wait (%p1155_p10), %s250_s27, 128  }
  0x8d   : > { %891 = vsyncadd (%p1155_p10), %s250_s27, 4294967168  ;;  %v323_v0 = vld [vmem:[#allocation7] sm:$0xff]  ;;  %v324_v1 = vld [vmem:[#allocation7 + $0x8] sm:$0xff]  ;;  %v937_v8 = vmov 0.0|0.0   ;;  %vm321_vm0 = vcmask 7168   ;;  %v938_v9 = vmov 0.0  }
  0x8e   : > { %v312_v2 = vld [vmem:[%s253_s0] sm:$0xff]  ;;  %v325_v3 = vmul.f32 %v323_v0, %v323_v0  ;;  %v326_v6 = vmul.f32 %v324_v1, %v324_v1  ;;  %604 = vmatprep.subr.bf16.mxu0 %v937_v8  ;;  %322 = vst.msk [vmem:[#allocation3] sm:$0xff] %vm321_vm0, %v938_v9  ;;  %vm939_vm1 = vmmov 0   ;;  %vm411_vm2 = vcmask 130048   ;;  %s591_s21 = sshll.u32 %s922_s18, 7  ;;  %s293_s24 = scalar_lea.vmem [#allocation10], %s1207_s6 }
  0x8f   : > { %v313_v4 = vmul.f32 %v312_v2, %v312_v2  ;;  %v421_v5 = vld [vmem:[%s266_s8] sm:$0xff]  ;;  %601 = vmatprep.mubr.msk.f32.mxu0 %vm939_vm1, %v938_v9  ;;  %s456_s30 = sshll.u32 %s293_s24, 4  ;;  %s1230_s25 = scalar_lea.hbm %s1293_s3, %s591_s21  ;;  %s1232_s30 = int_to_ptr.vmem [resolvable:$true] %s456_s30 }
  0x90   : > { %327 = vadd.xlane.f32.xlu0 %v325_v3  ;;  %v422_v7 = vmul.f32 %v421_v5, %v421_v5  ;;  %s443_s5 = scalar_lea.sflag [#allocation6], %s251_s28  ;;  %s816_s12 = scalar_lea.vmem %s1232_s30, 128 }
  0x91   : > { %314 = vadd.xlane.f32.xlu1 %v313_v4  ;;  %p817_p10 = scmp.ne.s32.totalorder %s1232_s30, %s816_s12  ;;  %p1324_p1 = scmp.ne.s32.totalorder %s1307_s7, 0 }
  0x92   : > { %s940_s18 = smov [#allocation10]  }
  0x93   : > { %p818_p4 = pnand %p817_p10, %p1324_p1  ;;  %s820_s26 = sshll.u32 %s940_s18, 4  ;;  %s821_s26 = int_to_ptr.vmem [resolvable:$false] %s820_s26 }
  0x94   : > { %329 = vadd.xlane.f32.xlu0 %v326_v6  ;;  %s822_s10 = scalar_lea.vmem %s821_s26, 256  ;;  %p823_p12 = scmp.lt.s32.totalorder %s1232_s30, %s821_s26 }
  0x95   : > { %423 = vadd.xlane.f32.xlu1 %v422_v7  ;;  %v408_v36 = vld [vmem:[#allocation3] sm:$0xff]  ;;  %p819_p6 = pneg %p818_p4  ;;  %p824_p0 = scmp.lt.s32.totalorder %s822_s10, %s816_s12 }
  0x97   : > { %p825_p8 = por %p824_p0, %p823_p12 }
  0x99   : > { %p826_p2 = pnand %p825_p8, %p819_p6 }
 0x11d   : > { %v328_v10 = vpop.xlane.xlu0 %327 }
 0x11e   : > { %v315_v11 = vpop.xlane.xlu1 %314  ;;  %714 = vrsqrt.f32 %v328_v10 }
 0x11f   : > { %716 = vrsqrt.f32 %v315_v11 }
 0x121   : > { %v330_v12 = vpop.xlane.xlu0 %329 }
 0x122   : > { %v424_v13 = vpop.xlane.xlu1 %423  ;;  %718 = vrsqrt.f32 %v330_v12 }
 0x123   : > { %720 = vrsqrt.f32 %v424_v13 }
 0x128   : > { %v715_v14 = vpop.eup %714 }
 0x129   : > { %v717_v15 = vpop.eup %716  ;;  %v333_v17 = vmin.f32 %v715_v14, 10000.0 }
 0x12a   : > { %v317_v16 = vmin.f32 %v717_v15, 10000.0 }
 0x12b   : > { %v335_v24 = vmul.f32 %v333_v17, %v323_v0 }
 0x12c   : > { %v719_v18 = vpop.eup %718  ;;  %v318_v19 = vmul.f32 %v317_v16, %v312_v2 }
 0x12d   : > { %v721_v20 = vpop.eup %720  ;;  %v334_v21 = vmin.f32 %v719_v18, 10000.0 }
 0x12e   : > { %v426_v22 = vmin.f32 %v721_v20, 10000.0  ;;  %v319_v23 = vmul.f32 2.0, %v318_v19 }
 0x12f   : > { %v336_v25 = vmul.f32 %v334_v21, %v324_v1 }
 0x130   : > { %v427_v26 = vmul.f32 %v426_v22, %v421_v5 }
 0x131   : > { %v605_v27 = vpack.c.bf16 %v336_v25, %v335_v24 }
 0x132   : > { %v429_v28 = vmul.f32 %v427_v26, %v319_v23 }
 0x133   : > { %606 = vmatpush3.bf16.xpose.msra.mxu0 %v605_v27 }
 0x134   : > { %430 = vadd.xlane.f32.xlu0 %v429_v28 }
 0x13a   : > { %602 = vmatmul.mubr.f32.vlgmr.msra.gmra.mrb[0].mxu0 %v319_v23 }
 0x1c1   : > { %v431_v34 = vpop.xlane.xlu0 %430 }
 0x1c2   : > { %v434_v35 = vmul.f32 1.442695, %v431_v34 }
 0x20d   : > { %v404_v29 = vpop.f32.mrb[0].mxu0 }
 0x20e   : > { %v409_v30 = vmul.f32 1.442695, %v404_v29  ;;  %v603_v31 = vpop.f32.mrb[1].mxu0 }
 0x210   : > { %722 = vpow2.f32 %v409_v30 }
 0x211   : > { %724 = vpow2.f32 %v434_v35 }
 0x21a   : > { %v723_v32 = vpop.eup %722 }
 0x21b   : > { %v412_v33 = vsel %vm411_vm2, %v723_v32, 0.0  ;;  %v725_v41 = vpop.eup %724 }
 0x21c   : > { %413 = vadd.xlane.f32.xlu1 %v412_v33 }
 0x2a9   : > { %v414_v37 = vpop.xlane.xlu1 %413 }
 0x2aa   : > { %v415_v38 = vadd.f32 %v414_v37, %v408_v36 }
 0x2ac   : > { %417 = vst.msk [vmem:[#allocation3] sm:$0xff] %vm321_vm0, %v415_v38 }
 0x2b3   : > { %v432_v39 = vld [vmem:[#allocation3] sm:$0xff] }
 0x2b4   : > { %v589_v40 = vadd.f32 -7.389056, %v432_v39 }
 0x2b6   : > { %v436_v42 = vsub.f32 %v589_v40, %v725_v41 }
 0x2b8   : > { %v437_v43 = vmax.f32 %v436_v42, 1e-08 }
 0x2ba   : > { %726 = vlog2.f32 %v437_v43 }
 0x2c4   : > { %v727_v44 = vpop.eup %726 }
 0x2c5   : > { %v439_v45 = vmul.f32 0.6931472, %v727_v44 }
 0x2c7   : > { %v440_v46 = vsub.f32 %v439_v45, %v431_v34 }
 0x2c9   : > { %441 = vst.msk [vmem:[%s293_s24] sm:$0xff] %vm321_vm0, %v440_v46 }
 0x2ca   : > { %829 = shalt.err (!%p826_p2)
}
 0x2cb   : > { %s830_s28 = scalar_lea.hbm %s1230_s25, 128  ;;  %s834_s0 = scalar_lea.hbm %s1293_s3, 256 }
 0x2cc   : > { %p831_p3 = scmp.ne.s32.totalorder %s1230_s25, %s830_s28  ;;  %p835_p9 = scmp.lt.u32.totalorder %s1230_s25, %s1293_s3 }
 0x2cd   : > { %p836_p11 = scmp.lt.u32.totalorder %s834_s0, %s830_s28  ;;  %p838_p10 = scmp.lt.u32.totalorder %s830_s28, %s1230_s25 }
 0x2ce   : > { %p832_p5 = pnand %p831_p3, %p1324_p1 }
 0x2cf   : > { %p837_p13 = por %p836_p11, %p835_p9 }
 0x2d0   : > { %p833_p7 = pneg %p832_p5 }
 0x2d1   : > { %p839_p4 = por %p838_p10, %p837_p13 }
 0x2d3   : > { %p840_p6 = pnand %p839_p4, %p833_p7 }
 0x2d5   : > { %843 = shalt.err (!%p840_p6)
}
 0x2d6   : > { %615 = dma.vmem_to_hbm [thread:$0]  (%p1324_p1), %s1232_s30, 128, %s1230_s25, %s443_s5  }
 0x2d7 PF: > { %s468_s8 = sand.u32 1, %s910_s15   ;;  %p1325_p12 = scmp.ne.s32.totalorder %s1308_s9, 0 }
 0x2d8   : > { %p1326_p0 = scmp.ge.s32.totalorder %s930_s20, 2  ;;  %s469_s21 = scalar_lea.sflag [#allocation6], %s468_s8 }
 0x2da   : > { %p629_p8 = pnand %p1326_p0, %p1325_p12 }
 0x2dc   : > { %893 = dma.done.wait (!%p629_p8), %s469_s21, 128  }
 0x2dd   : > { %895 = vsyncadd (!%p629_p8), %s469_s21, 4294967168  ;;  %s20_s20 = sadd.s32 1, %s930_s20   ;;  %s1327_s18 = sld [smem:[#allocation15_spill]] }
 0x2de   : > { %p17_p2 = scmp.ge.s32.totalorder %s20_s20, 4   ;;  %s1328_s19 = sld [smem:[#allocation16_spill]] }
 0x2df   : > { %s1329_s12 = smov %s902_s13  ;;  %s1330_s13 = smov %s906_s14 }
 0x2e0   : > { %s1331_s14 = smov %s1160_s29  ;;  %s1332_s15 = smov %s914_s16 }
 0x2e1   : > { %s1333_s16 = smov %s918_s17  ;;  %s1334_s17 = smov %s1035_s4 }
 0x2e2   :  { %19 = sbr.rel (!%p17_p2) target bundleno = 11 (0xb), region = 101 }
 0x2e9   :  { %474 = vsyncpa [#allocation5], 1 }
 0x2ea   :  { %476 = vsyncpa [#allocation5 + $0x1], 1 }
 0x2eb   :  { %477 = vsyncpa [#allocation8], 1 }
 0x2ec   :  { %478 = vsyncpa [#allocation6], 1 }
 0x2ed   :  { %480 = vsyncpa [#allocation6 + $0x1], 1 }

</bundles_post_ra>
